<compile_context>
chip_gen: v7x
topology: tpu7x:2x2x1
jax: 0.10.0
libtpu: 0.0.40
codegen_flags: <defaults>
</compile_context>

<pallas_src>
import functools

import jax
import jax.numpy as jnp
from jax.experimental import pallas as pl
from jax.experimental.pallas import tpu as pltpu

IN_FEATURES = 28 * 28 * 1   # 784
HIDDEN = 200
OUT_FEATURES = 10

HIDDEN_PAD = 256            # lane-dense hidden width (multiple of 128)
OUT_PAD = 128               # lane-dense output width (multiple of 128)
MAX_TB = 512                # batch tile (sweepable; 512 keeps v5e VMEM happy
                            # and gives >=2 parallel steps on v7x for B>512)


def _round_up(x, m):
    return ((x + m - 1) // m) * m


def mlp_kernel(x_ref, w1_ref, b1_ref, w2_ref, b2_ref, out_ref):
    """Fused 2-layer MLP on one batch tile.

    x_ref  : (TB, 784)   f32  (cast to bf16 in-kernel for the MXU)
    w1_ref : (784, 256)  bf16 (cols 200:256 zero)
    b1_ref : (1, 256)    f32  (zero-padded)
    w2_ref : (256, 128)  bf16 (rows 200:256 / cols 10:128 zero)
    b2_ref : (1, 128)    f32  (zero-padded)
    out_ref: (TB, 128)   bf16
    """
    x = x_ref[...].astype(jnp.bfloat16)
    # fc1: bf16 MXU matmul, f32 accumulation; bias + ReLU on the VPU in f32.
    h = jnp.dot(x, w1_ref[...], preferred_element_type=jnp.float32)
    h = jnp.maximum(h + b1_ref[...], 0.0)                       # (TB, 256) f32
    # fc2: bf16 MXU matmul, f32 accumulation. Padded hidden rows of W2 are
    # zero so the padding contributes nothing.
    o = jnp.dot(h.astype(jnp.bfloat16), w2_ref[...],
                preferred_element_type=jnp.float32)             # (TB, 128) f32
    out_ref[...] = (o + b2_ref[...]).astype(out_ref.dtype)


def prepare_params(w1, b1, w2, b2):
    """One-time padding + bf16 cast of the weights (cache & reuse the result).

    Weights are stored as (in_features, out_features), i.e. W.T vs PyTorch.
    """
    w1_p = jnp.zeros((IN_FEATURES, HIDDEN_PAD), jnp.bfloat16).at[
        :, :HIDDEN].set(w1.astype(jnp.bfloat16))
    b1_p = jnp.zeros((1, HIDDEN_PAD), jnp.float32).at[
        :, :HIDDEN].set(b1.reshape(1, -1).astype(jnp.float32))
    w2_p = jnp.zeros((HIDDEN_PAD, OUT_PAD), jnp.bfloat16).at[
        :HIDDEN, :OUT_FEATURES].set(w2.astype(jnp.bfloat16))
    b2_p = jnp.zeros((1, OUT_PAD), jnp.float32).at[
        :, :OUT_FEATURES].set(b2.reshape(1, -1).astype(jnp.float32))
    return w1_p, b1_p, w2_p, b2_p


@functools.partial(jax.jit, static_argnames=())
def net_forward(x, params):
    """x: (B, 784) f32, params = prepare_params(...)  ->  (B, 10) f32."""
    w1_p, b1_p, w2_p, b2_p = params
    B = x.shape[0]

    # Batch tile: multiple of 16 (bf16 sublane packing). Small batches run as
    # a single padded tile; large batches tile at MAX_TB (>=2 grid steps for
    # B > MAX_TB -> both TensorCores on v7x).
    B16 = _round_up(B, 16)
    TB = B16 if B16 <= MAX_TB else MAX_TB
    B_pad = _round_up(B, TB)

    # Only pad the ragged last tile; no whole-array cast/copy in the wrapper.
    x_in = x if B_pad == B else jnp.pad(x, ((0, B_pad - B), (0, 0)))

    grid = (B_pad // TB,)

    out_padded = pl.pallas_call(
        mlp_kernel,
        out_shape=jax.ShapeDtypeStruct((B_pad, OUT_PAD), jnp.bfloat16),
        grid=grid,
        in_specs=[
            pl.BlockSpec((TB, IN_FEATURES), lambda i: (i, 0)),          # x tile
            pl.BlockSpec((IN_FEATURES, HIDDEN_PAD), lambda i: (0, 0)),  # W1 (resident)
            pl.BlockSpec((1, HIDDEN_PAD), lambda i: (0, 0)),            # b1
            pl.BlockSpec((HIDDEN_PAD, OUT_PAD), lambda i: (0, 0)),      # W2 (resident)
            pl.BlockSpec((1, OUT_PAD), lambda i: (0, 0)),               # b2
        ],
        out_specs=pl.BlockSpec((TB, OUT_PAD), lambda i: (i, 0)),
        compiler_params=pltpu.CompilerParams(
            # Batch tiles are independent -> megacore sharding on v7x.
            dimension_semantics=("parallel",),
        ),
    )(x_in, w1_p, b1_p, w2_p, b2_p)

    # Tiny slice + cast on the bf16 output; fuses under jit.
    return out_padded[:B, :OUT_FEATURES].astype(jnp.float32)


def init_params(key):
    """Deterministic init mimicking PyTorch nn.Linear (U(-1/sqrt(fan_in), +))."""
    k1, k2, k3, k4 = jax.random.split(key, 4)
    in1, out1 = IN_FEATURES, HIDDEN
    in2, out2 = HIDDEN, OUT_FEATURES
    lim1 = 1.0 / jnp.sqrt(jnp.float32(in1))
    lim2 = 1.0 / jnp.sqrt(jnp.float32(in2))
    # Stored as (in_features, out_features) == W.T relative to PyTorch.
    w1 = jax.random.uniform(k1, (in1, out1), jnp.float32, -lim1, lim1)
    b1 = jax.random.uniform(k2, (out1,), jnp.float32, -lim1, lim1)
    w2 = jax.random.uniform(k3, (in2, out2), jnp.float32, -lim2, lim2)
    b2 = jax.random.uniform(k4, (out2,), jnp.float32, -lim2, lim2)
    return w1, b1, w2, b2


if __name__ == "__main__":
    key = jax.random.PRNGKey(0)
    kx, kp = jax.random.split(key)

    B = 8
    x = jax.random.normal(kx, (B, IN_FEATURES), jnp.float32)  # flattened 28x28
    w1, b1, w2, b2 = init_params(kp)

    params = prepare_params(w1, b1, w2, b2)   # one-time prep, cached

    out = net_forward(x, params)
    out = jax.block_until_ready(out)
    assert out.shape == (B, OUT_FEATURES)

    # Pure-JAX reference using the same bf16 storage precision + f32 accumulation
    # (and bf16 output rounding, matching the kernel's bf16 store).
    xb = x.astype(jnp.bfloat16).astype(jnp.float32)
    w1f = w1.astype(jnp.bfloat16).astype(jnp.float32)
    w2f = w2.astype(jnp.bfloat16).astype(jnp.float32)
    h_ref = jnp.maximum(xb @ w1f + b1, 0.0)
    ref = h_ref.astype(jnp.bfloat16).astype(jnp.float32) @ w2f + b2
    ref = ref.astype(jnp.bfloat16).astype(jnp.float32)
    assert jnp.allclose(out, ref, atol=2e-2, rtol=2e-2), (
        float(jnp.max(jnp.abs(out - ref))))

    print("KERNEL_OK")
</pallas_src>

<mosaic_0001>
module attributes {stable_mosaic.version = 11 : i64} {
  func.func @mlp_kernel(%arg0: i32, %arg1: memref<16x784xf32, #tpu.memory_space<vmem>>, %arg2: memref<784x256xbf16, #tpu.memory_space<vmem>>, %arg3: memref<1x256xf32, #tpu.memory_space<vmem>>, %arg4: memref<256x128xbf16, #tpu.memory_space<vmem>>, %arg5: memref<1x128xf32, #tpu.memory_space<vmem>>, %arg6: memref<16x128xbf16, #tpu.memory_space<vmem>>) attributes {dimension_semantics = [#tpu.dimension_semantics<parallel>], iteration_bounds = array<i64: 1>, scalar_prefetch = 0 : i64, scratch_operands = 0 : i64, tpu.core_type = #tpu.core_type<tc>, window_params = [{transform_indices = @transform_0, window_bounds = array<i64: 16, 784>}, {pipeline_mode = #tpu.pipeline_mode<synchronous>, transform_indices = @transform_1, window_bounds = array<i64: 784, 256>}, {pipeline_mode = #tpu.pipeline_mode<synchronous>, transform_indices = @transform_2, window_bounds = array<i64: 1, 256>}, {pipeline_mode = #tpu.pipeline_mode<synchronous>, transform_indices = @transform_3, window_bounds = array<i64: 256, 128>}, {pipeline_mode = #tpu.pipeline_mode<synchronous>, transform_indices = @transform_4, window_bounds = array<i64: 1, 128>}, {transform_indices = @transform_5, window_bounds = array<i64: 16, 128>}]} {
    %c0 = arith.constant 0 : index
    %c0_0 = arith.constant 0 : index
    %0 = vector.load %arg1[%c0, %c0_0] : memref<16x784xf32, #tpu.memory_space<vmem>>, vector<16x784xf32>
    %1 = arith.truncf %0 : vector<16x784xf32> to vector<16x784xbf16>
    %c0_1 = arith.constant 0 : index
    %c0_2 = arith.constant 0 : index
    %2 = vector.load %arg2[%c0_1, %c0_2] : memref<784x256xbf16, #tpu.memory_space<vmem>>, vector<784x256xbf16>
    %cst = arith.constant dense<0.000000e+00> : vector<16x256xf32>
    %3 = tpu.matmul %1, %2, %cst {dimension_numbers = #tpu.dot_dimension_numbers<[1], [0], [0], [1], [0, 0, 1, 1], [], []>} : vector<16x784xbf16>, vector<784x256xbf16>, vector<16x256xf32> -> vector<16x256xf32>
    %c0_3 = arith.constant 0 : index
    %c0_4 = arith.constant 0 : index
    %4 = vector.load %arg3[%c0_3, %c0_4] : memref<1x256xf32, #tpu.memory_space<vmem>>, vector<1x256xf32>
    %5 = vector.broadcast %4 : vector<1x256xf32> to vector<16x256xf32>
    %6 = arith.addf %3, %5 : vector<16x256xf32>
    %cst_5 = arith.constant 0.000000e+00 : f32
    %7 = vector.broadcast %cst_5 : f32 to vector<16x256xf32>
    %8 = arith.maximumf %6, %7 : vector<16x256xf32>
    %9 = arith.truncf %8 : vector<16x256xf32> to vector<16x256xbf16>
    %c0_6 = arith.constant 0 : index
    %c0_7 = arith.constant 0 : index
    %10 = vector.load %arg4[%c0_6, %c0_7] : memref<256x128xbf16, #tpu.memory_space<vmem>>, vector<256x128xbf16>
    %cst_8 = arith.constant dense<0.000000e+00> : vector<16x128xf32>
    %11 = tpu.matmul %9, %10, %cst_8 {dimension_numbers = #tpu.dot_dimension_numbers<[1], [0], [0], [1], [0, 0, 1, 1], [], []>} : vector<16x256xbf16>, vector<256x128xbf16>, vector<16x128xf32> -> vector<16x128xf32>
    %c0_9 = arith.constant 0 : index
    %c0_10 = arith.constant 0 : index
    %12 = vector.load %arg5[%c0_9, %c0_10] : memref<1x128xf32, #tpu.memory_space<vmem>>, vector<1x128xf32>
    %13 = vector.broadcast %12 : vector<1x128xf32> to vector<16x128xf32>
    %14 = arith.addf %11, %13 : vector<16x128xf32>
    %15 = arith.truncf %14 : vector<16x128xf32> to vector<16x128xbf16>
    %c0_11 = arith.constant 0 : index
    %c0_12 = arith.constant 0 : index
    %16 = vector.load %arg6[%c0_11, %c0_12] : memref<16x128xbf16, #tpu.memory_space<vmem>>, vector<16x128xbf16>
    tpu.vector_store %arg6[%c0_11, %c0_12], %15 {strides = array<i32>} : memref<16x128xbf16, #tpu.memory_space<vmem>>, vector<16x128xbf16>,
    return
  }
  func.func @transform_0(%arg0: i32) -> (i32, i32) {
    %c0_i32 = arith.constant 0 : i32
    %c0_i32_0 = arith.constant 0 : i32
    return %arg0, %c0_i32 : i32, i32
  }
  func.func @transform_1(%arg0: i32) -> (i32, i32) {
    %c0_i32 = arith.constant 0 : i32
    %c0_i32_0 = arith.constant 0 : i32
    %c0_i32_1 = arith.constant 0 : i32
    return %c0_i32, %c0_i32_0 : i32, i32
  }
  func.func @transform_2(%arg0: i32) -> (i32, i32) {
    %c0_i32 = arith.constant 0 : i32
    %c0_i32_0 = arith.constant 0 : i32
    %c0_i32_1 = arith.constant 0 : i32
    return %c0_i32, %c0_i32_0 : i32, i32
  }
  func.func @transform_3(%arg0: i32) -> (i32, i32) {
    %c0_i32 = arith.constant 0 : i32
    %c0_i32_0 = arith.constant 0 : i32
    %c0_i32_1 = arith.constant 0 : i32
    return %c0_i32, %c0_i32_0 : i32, i32
  }
  func.func @transform_4(%arg0: i32) -> (i32, i32) {
    %c0_i32 = arith.constant 0 : i32
    %c0_i32_0 = arith.constant 0 : i32
    %c0_i32_1 = arith.constant 0 : i32
    return %c0_i32, %c0_i32_0 : i32, i32
  }
  func.func @transform_5(%arg0: i32) -> (i32, i32) {
    %c0_i32 = arith.constant 0 : i32
    %c0_i32_0 = arith.constant 0 : i32
    return %arg0, %c0_i32 : i32, i32
  }
}

</mosaic_0001>

<bundles_post_ra>
// kernel: net_forward.1
= control target key start
LH: loop header
LB: loop body
LE: loop exit
PB: predicated region body
PF: predicated region fallthrough
CT: control target
= control target key end

     0   :  { %10 = vsyncpa [#allocation3], 0  ;;  %s1383_s18 = smov [#allocation2]   ;;  %s1528_s0 = inlined_call_operand.vmem [shape: f32[16,784], index: 0, kind: input, shape index: {}]   ;;  %s1529_s1 = inlined_call_operand.hbm [shape: bf16[784,256], index: 1, kind: input, shape index: {}]   ;;  %s1530_s2 = inlined_call_operand.vmem [shape: f32[1,256], index: 2, kind: input, shape index: {}]   ;;  %s1531_s3 = inlined_call_operand.vmem [shape: bf16[256,128], index: 3, kind: input, shape index: {}]   ;;  %s1532_s4 = inlined_call_operand.vmem [shape: f32[1,128], index: 4, kind: input, shape index: {}]   ;;  %s1533_s5 = inlined_call_operand.vmem [shape: bf16[16,128], index: 5, kind: output, shape index: {}]  }
   0x1   :  { %s18_s19 = sshll.u32 %s1383_s18, 4  ;;  %s1359_s22 = scalar_lea.hbm %s1529_s1, 12544  ;;  %s19_s19 = int_to_ptr.vmem [resolvable:$true] %s18_s19 }
   0x2   :  { %p1360_p0 = scmp.ne.s32.totalorder %s1529_s1, %s1359_s22  ;;  %p1363_p1 = scmp.lt.u32.totalorder %s1359_s22, %s1529_s1 }
   0x4   :  { %p1365_p2 = pnand %p1363_p1, %p1360_p0 }
   0x6   :  { %1368 = shalt.err (!%p1365_p2)
}
   0x7   :  { %s1369_s27 = scalar_lea.vmem %s19_s19, 12544  ;;  %p1374_p4 = scmp.lt.s32.totalorder %s19_s19, %s19_s19 }
   0x8   :  { %p1370_p3 = scmp.ne.s32.totalorder %s19_s19, %s1369_s27  ;;  %p1375_p5 = scmp.lt.s32.totalorder %s1369_s27, %s1369_s27 }
   0xa   :  { %p1376_p6 = por %p1375_p5, %p1374_p4 }
   0xc   :  { %p1377_p7 = pnand %p1376_p6, %p1370_p3 }
   0xe   :  { %1380 = shalt.err (!%p1377_p7)
}
   0xf   :  { %s1384_s28 = smov 128   ;;  %s1385_s29 = smov 8  }
  0x10   :  { %24 = dma.hbm_to_vmem [thread:$0]  %s1529_s1, 12544, %s19_s19, [#allocation3], %s1384_s28, %s1384_s28, %s1385_s29  }
  0x11   :  { %1381 = dma.done.wait [#allocation3], 12544  }
  0x12   :  { %1382 = vsyncadd [#allocation3], 4294954752  ;;  %v1196_v0 = vld [vmem:[#allocation2 + $0x104] ss:$8 sps:$4 sm:$0xff]   ;;  %v1198_v1 = vld [vmem:[#allocation2 + $0x100] ss:$8 sps:$4 sm:$0xff]  }
  0x13   :  { %703 = vmatprep.subr.bf16.mxu0 %v1196_v0  ;;  %v1199_v2 = vld [vmem:[#allocation2 + $0x114] ss:$8 sps:$4 sm:$0xff]   ;;  %v1201_v3 = vld [vmem:[#allocation2 + $0x110] ss:$8 sps:$4 sm:$0xff]   ;;  %v1202_v4 = vld [vmem:[#allocation2 + $0x124] ss:$8 sps:$4 sm:$0xff]  }
  0x14   :  { %704 = vmatpush1.bf16.msra.mxu0 %v1198_v1  ;;  %v1204_v5 = vld [vmem:[#allocation2 + $0x120] ss:$8 sps:$4 sm:$0xff]   ;;  %v1205_v6 = vld [vmem:[#allocation2 + $0x134] ss:$8 sps:$4 sm:$0xff]   ;;  %v1207_v7 = vld [vmem:[#allocation2 + $0x130] ss:$8 sps:$4 sm:$0xff]  }
  0x15   :  { %705 = vmatprep.subr.bf16.mxu0 %v1199_v2  ;;  %v1208_v8 = vld [vmem:[#allocation2 + $0x144] ss:$8 sps:$4 sm:$0xff]   ;;  %v1210_v9 = vld [vmem:[#allocation2 + $0x140] ss:$8 sps:$4 sm:$0xff]   ;;  %v1211_v10 = vld [vmem:[#allocation2 + $0x154] ss:$8 sps:$4 sm:$0xff]  }
  0x16   :  { %v1213_v11 = vld [vmem:[#allocation2 + $0x150] ss:$8 sps:$4 sm:$0xff]   ;;  %v1238_v12 = vld [vmem:[#allocation2 + $0x4] ss:$8 sps:$4 sm:$0xff]   ;;  %v1240_v13 = vld [vmem:[#allocation2] ss:$8 sps:$4 sm:$0xff]  }
  0x17   :  { %v1214_v14 = vld [vmem:[#allocation2 + $0x164] ss:$8 sps:$4 sm:$0xff]   ;;  %660 = vmatprep.subr.bf16.mxu1 %v1238_v12  ;;  %v1244_v15 = vld [vmem:[#allocation2 + $0x14] ss:$8 sps:$4 sm:$0xff]   ;;  %v1246_v16 = vld [vmem:[#allocation2 + $0x10] ss:$8 sps:$4 sm:$0xff]  }
  0x18   :  { %706 = vmatpush1.bf16.msra.mxu0 %v1201_v3  ;;  %661 = vmatpush1.bf16.msra.mxu1 %v1240_v13  ;;  %v1216_v17 = vld [vmem:[#allocation2 + $0x160] ss:$8 sps:$4 sm:$0xff]   ;;  %v1217_v18 = vld [vmem:[#allocation2 + $0x174] ss:$8 sps:$4 sm:$0xff]   ;;  %v1250_v19 = vld [vmem:[#allocation2 + $0x24] ss:$8 sps:$4 sm:$0xff]  }
  0x19   :  { %707 = vmatprep.subr.bf16.mxu0 %v1202_v4  ;;  %662 = vmatprep.subr.bf16.mxu1 %v1244_v15  ;;  %v38_v20 = vld [vmem:[%s1528_s0 + $0x18] sm:$0xff]  ;;  %v45_v21 = vld [vmem:[%s1528_s0 + $0x50] sm:$0xff]  ;;  %v1252_v22 = vld [vmem:[#allocation2 + $0x20] ss:$8 sps:$4 sm:$0xff]   ;;  %vm656_vm0 = vcmask 130048  }
  0x1a   :  { %v52_v23 = vpack.c.bf16 %v45_v21, %v38_v20  ;;  %v1219_v24 = vld [vmem:[#allocation2 + $0x170] ss:$8 sps:$4 sm:$0xff]   ;;  %v1220_v25 = vld [vmem:[#allocation2 + $0x184] ss:$8 sps:$4 sm:$0xff]   ;;  %v1256_v26 = vld [vmem:[#allocation2 + $0x34] ss:$8 sps:$4 sm:$0xff]  }
  0x1b   :  { %v1258_v27 = vld [vmem:[#allocation2 + $0x30] ss:$8 sps:$4 sm:$0xff]   ;;  %v1222_v28 = vld [vmem:[#allocation2 + $0x180] ss:$8 sps:$4 sm:$0xff]   ;;  %v1262_v29 = vld [vmem:[#allocation2 + $0x44] ss:$8 sps:$4 sm:$0xff]  }
  0x1c   :  { %708 = vmatpush1.bf16.msra.mxu0 %v1204_v5  ;;  %663 = vmatpush1.bf16.msra.mxu1 %v1246_v16  ;;  %v1223_v30 = vld [vmem:[#allocation2 + $0x194] ss:$8 sps:$4 sm:$0xff]   ;;  %v1264_v31 = vld [vmem:[#allocation2 + $0x40] ss:$8 sps:$4 sm:$0xff]   ;;  %v1225_v32 = vld [vmem:[#allocation2 + $0x190] ss:$8 sps:$4 sm:$0xff]  }
  0x1d   :  { %709 = vmatprep.subr.bf16.mxu0 %v1205_v6  ;;  %664 = vmatprep.subr.bf16.mxu1 %v1250_v19  ;;  %v1268_v33 = vld [vmem:[#allocation2 + $0x54] ss:$8 sps:$4 sm:$0xff]   ;;  %v1226_v34 = vld [vmem:[#allocation2 + $0x1a4] ss:$8 sps:$4 sm:$0xff]   ;;  %v1270_v35 = vld [vmem:[#allocation2 + $0x50] ss:$8 sps:$4 sm:$0xff]  }
  0x1e   :  { %735 = vmatprep.mubr.bf16.mxu0 %v52_v23  ;;  %v1228_v36 = vld [vmem:[#allocation2 + $0x1a0] ss:$8 sps:$4 sm:$0xff]   ;;  %v1274_v37 = vld [vmem:[#allocation2 + $0x64] ss:$8 sps:$4 sm:$0xff]   ;;  %v1229_v38 = vld [vmem:[#allocation2 + $0x1b4] ss:$8 sps:$4 sm:$0xff]  }
  0x1f   :  { %v1276_v39 = vld [vmem:[#allocation2 + $0x60] ss:$8 sps:$4 sm:$0xff]   ;;  %v1231_v40 = vld [vmem:[#allocation2 + $0x1b0] ss:$8 sps:$4 sm:$0xff]   ;;  %v1280_v41 = vld [vmem:[#allocation2 + $0x74] ss:$8 sps:$4 sm:$0xff]  }
  0x20   :  { %710 = vmatpush1.bf16.msra.mxu0 %v1207_v7  ;;  %665 = vmatpush1.bf16.msra.mxu1 %v1252_v22  ;;  %v1232_v42 = vld [vmem:[#allocation2 + $0x1c4] ss:$8 sps:$4 sm:$0xff]   ;;  %v1282_v43 = vld [vmem:[#allocation2 + $0x70] ss:$8 sps:$4 sm:$0xff]   ;;  %v1234_v44 = vld [vmem:[#allocation2 + $0x1c0] ss:$8 sps:$4 sm:$0xff]  }
  0x21   :  { %711 = vmatprep.subr.bf16.mxu0 %v1208_v8  ;;  %666 = vmatprep.subr.bf16.mxu1 %v1256_v26  ;;  %v1286_v45 = vld [vmem:[#allocation2 + $0x84] ss:$8 sps:$4 sm:$0xff]   ;;  %v1235_v46 = vld [vmem:[#allocation2 + $0x1d4] ss:$8 sps:$4 sm:$0xff]   ;;  %v1288_v47 = vld [vmem:[#allocation2 + $0x80] ss:$8 sps:$4 sm:$0xff]  }
  0x22   :  { %v1237_v48 = vld [vmem:[#allocation2 + $0x1d0] ss:$8 sps:$4 sm:$0xff]   ;;  %v1292_v49 = vld [vmem:[#allocation2 + $0x94] ss:$8 sps:$4 sm:$0xff]   ;;  %v1241_v50 = vld [vmem:[#allocation2 + $0x1e4] ss:$8 sps:$4 sm:$0xff]  }
  0x23   :  { %v1294_v51 = vld [vmem:[#allocation2 + $0x90] ss:$8 sps:$4 sm:$0xff]   ;;  %v1243_v52 = vld [vmem:[#allocation2 + $0x1e0] ss:$8 sps:$4 sm:$0xff]   ;;  %v1298_v53 = vld [vmem:[#allocation2 + $0xa4] ss:$8 sps:$4 sm:$0xff]  }
  0x24   :  { %712 = vmatpush1.bf16.msra.mxu0 %v1210_v9  ;;  %667 = vmatpush1.bf16.msra.mxu1 %v1258_v27  ;;  %v1247_v54 = vld [vmem:[#allocation2 + $0x1f4] ss:$8 sps:$4 sm:$0xff]   ;;  %v1249_v55 = vld [vmem:[#allocation2 + $0x1f0] ss:$8 sps:$4 sm:$0xff]   ;;  %v1300_v57 = vld [vmem:[#allocation2 + $0xa0] ss:$8 sps:$4 sm:$0xff]  }
  0x25   :  { %713 = vmatprep.subr.bf16.mxu0 %v1211_v10  ;;  %668 = vmatprep.subr.bf16.mxu1 %v1262_v29  ;;  %v37_v56 = vld [vmem:[%s1528_s0 + $0x10] sm:$0xff]  ;;  %v44_v58 = vld [vmem:[%s1528_s0 + $0x48] sm:$0xff]  ;;  %v43_v2 = vld [vmem:[%s1528_s0 + $0x40] sm:$0xff] }
  0x26   :  { %v1304_v59 = vld [vmem:[#allocation2 + $0xb4] ss:$8 sps:$4 sm:$0xff]   ;;  %v1255_v60 = vld [vmem:[#allocation2 + $0x204] ss:$8 sps:$4 sm:$0xff]   ;;  %v51_v61 = vpack.c.bf16 %v44_v58, %v37_v56  ;;  %v1306_v62 = vld [vmem:[#allocation2 + $0xb0] ss:$8 sps:$4 sm:$0xff]  }
  0x27   :  { %v36_v63 = vld [vmem:[%s1528_s0 + $0x8] sm:$0xff]  ;;  %v1261_v3 = vld [vmem:[#allocation2 + $0x214] ss:$8 sps:$4 sm:$0xff]   ;;  %v1259_v6 = vld [vmem:[#allocation2 + $0x210] ss:$8 sps:$4 sm:$0xff]  }
  0x28   :  { %714 = vmatpush1.bf16.msra.mxu0 %v1213_v11  ;;  %669 = vmatpush1.bf16.msra.mxu1 %v1264_v31  ;;  %v1253_v0 = vld [vmem:[#allocation2 + $0x200] ss:$8 sps:$4 sm:$0xff]   ;;  %v1310_v1 = vld [vmem:[#allocation2 + $0xc4] ss:$8 sps:$4 sm:$0xff]   ;;  %v50_v4 = vpack.c.bf16 %v43_v2, %v36_v63  ;;  %v1316_v7 = vld [vmem:[#allocation2 + $0xd4] ss:$8 sps:$4 sm:$0xff]  }
  0x29   :  { %715 = vmatprep.subr.bf16.mxu0 %v1214_v14  ;;  %670 = vmatprep.subr.bf16.mxu1 %v1268_v33  ;;  %v1312_v5 = vld [vmem:[#allocation2 + $0xc0] ss:$8 sps:$4 sm:$0xff]   ;;  %v1267_v8 = vld [vmem:[#allocation2 + $0x224] ss:$8 sps:$4 sm:$0xff]   ;;  %v1318_v13 = vld [vmem:[#allocation2 + $0xd0] ss:$8 sps:$4 sm:$0xff]  }
  0x2a   :  { %692 = vmatprep.mubr.bf16.mxu1 %v50_v4  ;;  %v40_v9 = vld [vmem:[%s1528_s0 + $0x28] sm:$0xff]  ;;  %v47_v10 = vld [vmem:[%s1528_s0 + $0x60] sm:$0xff]  ;;  %v1273_v15 = vld [vmem:[#allocation2 + $0x234] ss:$8 sps:$4 sm:$0xff]   ;;  %v1386_v31 = vmov 0  }
  0x2b   :  { %v1265_v11 = vld [vmem:[#allocation2 + $0x220] ss:$8 sps:$4 sm:$0xff]   ;;  %v54_v12 = vpack.c.bf16 %v47_v10, %v40_v9  ;;  %v1322_v14 = vld [vmem:[#allocation2 + $0xe4] ss:$8 sps:$4 sm:$0xff]   ;;  %v1271_v16 = vld [vmem:[#allocation2 + $0x230] ss:$8 sps:$4 sm:$0xff]  }
  0x2c   :  { %716 = vmatpush1.bf16.msra.mxu0 %v1216_v17  ;;  %671 = vmatpush1.bf16.msra.mxu1 %v1270_v35  ;;  %v1279_v17 = vld [vmem:[#allocation2 + $0x244] ss:$8 sps:$4 sm:$0xff]   ;;  %v1328_v19 = vld [vmem:[#allocation2 + $0xf4] ss:$8 sps:$4 sm:$0xff]   ;;  %v1330_v20 = vld [vmem:[#allocation2 + $0xf0] ss:$8 sps:$4 sm:$0xff]  }
  0x2d   :  { %717 = vmatprep.subr.bf16.mxu0 %v1217_v18  ;;  %672 = vmatprep.subr.bf16.mxu1 %v1274_v37  ;;  %v1324_v18 = vld [vmem:[#allocation2 + $0xe0] ss:$8 sps:$4 sm:$0xff]   ;;  %v42_v22 = vld [vmem:[%s1528_s0 + $0x38] sm:$0xff]  ;;  %v1355_v4 = vld [vmem:[%s1531_s3 + $0x70] sm:$0xff]  }
  0x2e   :  { %v35_v21 = vld [vmem:[%s1528_s0] sm:$0xff]  ;;  %v48_v33 = vld [vmem:[%s1528_s0 + $0x68] sm:$0xff]  ;;  %v1297_v35 = vld [vmem:[#allocation2 + $0x274] ss:$8 sps:$4 sm:$0xff]  }
  0x2f   :  { %v1277_v23 = vld [vmem:[#allocation2 + $0x240] ss:$8 sps:$4 sm:$0xff]   ;;  %v49_v27 = vpack.c.bf16 %v42_v22, %v35_v21  ;;  %v1340_v58 = vld [vmem:[#allocation2 + $0x2f0] ss:$8 sps:$4 sm:$0xff]  }
  0x30   :  { %718 = vmatpush1.bf16.msra.mxu0 %v1219_v24  ;;  %673 = vmatpush1.bf16.msra.mxu1 %v1276_v39  ;;  %v1339_v24 = vld [vmem:[#allocation2 + $0x304] ss:$8 sps:$4 sm:$0xff]   ;;  %v1337_v26 = vld [vmem:[#allocation2 + $0x300] ss:$8 sps:$4 sm:$0xff]   ;;  %v1350_v63 = vld [vmem:[%s1531_s3 + $0x18] sm:$0xff]  }
  0x31   :  { %719 = vmatprep.subr.bf16.mxu0 %v1220_v25  ;;  %674 = vmatprep.subr.bf16.mxu1 %v1280_v41  ;;  %v1285_v25 = vld [vmem:[#allocation2 + $0x254] ss:$8 sps:$4 sm:$0xff]   ;;  %v1343_v29 = vld [vmem:[%s1531_s3 + $0x40] sm:$0xff]   ;;  %v1345_v39 = vld [vmem:[%s1531_s3 + $0x48] sm:$0xff]  }
  0x32   :  { %v1344_v37 = vld [vmem:[%s1531_s3] sm:$0xff]   ;;  %v1346_v41 = vld [vmem:[%s1531_s3 + $0x8] sm:$0xff]  }
  0x33   :  { %v1334_v56 = vld [vmem:[#allocation2 + $0x2e0] ss:$8 sps:$4 sm:$0xff]  }
  0x34   :  { %720 = vmatpush1.bf16.msra.mxu0 %v1222_v28  ;;  %675 = vmatpush1.bf16.msra.mxu1 %v1282_v43  ;;  %v1283_v28 = vld [vmem:[#allocation2 + $0x250] ss:$8 sps:$4 sm:$0xff]   ;;  %v1353_v2 = vld [vmem:[%s1531_s3 + $0x68] sm:$0xff]  }
  0x35   :  { %721 = vmatprep.subr.bf16.mxu0 %v1223_v30  ;;  %676 = vmatprep.subr.bf16.mxu1 %v1286_v45  ;;  %v1291_v30 = vld [vmem:[#allocation2 + $0x264] ss:$8 sps:$4 sm:$0xff]   ;;  %v1347_v43 = vld [vmem:[%s1531_s3 + $0x50] sm:$0xff]  }
  0x36   :  { %v1348_v45 = vld [vmem:[%s1531_s3 + $0x10] sm:$0xff]  }
  0x38   :  { %722 = vmatpush1.bf16.msra.mxu0 %v1225_v32  ;;  %677 = vmatpush1.bf16.msra.mxu1 %v1288_v47  ;;  %v41_v32 = vld [vmem:[%s1528_s0 + $0x30] sm:$0xff]  ;;  %v1315_v47 = vld [vmem:[#allocation2 + $0x2a4] ss:$8 sps:$4 sm:$0xff]  }
  0x39   :  { %723 = vmatprep.subr.bf16.mxu0 %v1226_v34  ;;  %678 = vmatprep.subr.bf16.mxu1 %v1292_v49  ;;  %v1289_v34 = vld [vmem:[#allocation2 + $0x260] ss:$8 sps:$4 sm:$0xff]   ;;  %v1321_v49 = vld [vmem:[#allocation2 + $0x2b4] ss:$8 sps:$4 sm:$0xff]  }
  0x3c   :  { %724 = vmatpush1.bf16.msra.mxu0 %v1228_v36  ;;  %679 = vmatpush1.bf16.msra.mxu1 %v1294_v51  ;;  %v55_v36 = vpack.c.bf16 %v48_v33, %v41_v32  ;;  %v1327_v51 = vld [vmem:[#allocation2 + $0x2c4] ss:$8 sps:$4 sm:$0xff]  }
  0x3d   :  { %725 = vmatprep.subr.bf16.mxu0 %v1229_v38  ;;  %680 = vmatprep.subr.bf16.mxu1 %v1298_v53  ;;  %v1295_v38 = vld [vmem:[#allocation2 + $0x270] ss:$8 sps:$4 sm:$0xff]   ;;  %v1333_v53 = vld [vmem:[#allocation2 + $0x2d4] ss:$8 sps:$4 sm:$0xff]  }
  0x40   :  { %726 = vmatpush1.bf16.msra.mxu0 %v1231_v40  ;;  %681 = vmatpush1.bf16.msra.mxu1 %v1300_v57  ;;  %v1303_v40 = vld [vmem:[#allocation2 + $0x284] ss:$8 sps:$4 sm:$0xff]   ;;  %v1342_v57 = vld [vmem:[#allocation2 + $0x2f4] ss:$8 sps:$4 sm:$0xff]  }
  0x41   :  { %727 = vmatprep.subr.bf16.mxu0 %v1232_v42  ;;  %682 = vmatprep.subr.bf16.mxu1 %v1304_v59  ;;  %v1301_v42 = vld [vmem:[#allocation2 + $0x280] ss:$8 sps:$4 sm:$0xff]  }
  0x42   :  { %v39_v59 = vld [vmem:[%s1528_s0 + $0x20] sm:$0xff] }
  0x44   :  { %728 = vmatpush1.bf16.msra.mxu0 %v1234_v44  ;;  %683 = vmatpush1.bf16.msra.mxu1 %v1306_v62  ;;  %v1309_v44 = vld [vmem:[#allocation2 + $0x294] ss:$8 sps:$4 sm:$0xff]  }
  0x45   :  { %729 = vmatprep.subr.bf16.mxu0 %v1235_v46  ;;  %684 = vmatprep.subr.bf16.mxu1 %v1310_v1  ;;  %v1307_v46 = vld [vmem:[#allocation2 + $0x290] ss:$8 sps:$4 sm:$0xff]   ;;  %v1352_v1 = vld [vmem:[%s1531_s3 + $0x20] sm:$0xff]  }
  0x46   :  { %v1349_v62 = vld [vmem:[%s1531_s3 + $0x58] sm:$0xff]  }
  0x48   :  { %730 = vmatpush1.bf16.msra.mxu0 %v1237_v48  ;;  %685 = vmatpush1.bf16.msra.mxu1 %v1312_v5  ;;  %v1313_v48 = vld [vmem:[#allocation2 + $0x2a0] ss:$8 sps:$4 sm:$0xff]   ;;  %v1356_v5 = vld [vmem:[%s1531_s3 + $0x30] sm:$0xff]  }
  0x49   :  { %731 = vmatprep.subr.bf16.mxu0 %v1241_v50  ;;  %686 = vmatprep.subr.bf16.mxu1 %v1316_v7  ;;  %v1319_v50 = vld [vmem:[#allocation2 + $0x2b0] ss:$8 sps:$4 sm:$0xff]  }
  0x4a   :  { %v1358_v7 = vld [vmem:[%s1531_s3 + $0x38] sm:$0xff]  }
  0x4c   :  { %732 = vmatpush1.bf16.msra.mxu0 %v1243_v52  ;;  %687 = vmatpush1.bf16.msra.mxu1 %v1318_v13  ;;  %v1325_v52 = vld [vmem:[#allocation2 + $0x2c0] ss:$8 sps:$4 sm:$0xff]  }
  0x4d   :  { %733 = vmatprep.subr.bf16.mxu0 %v1247_v54  ;;  %688 = vmatprep.subr.bf16.mxu1 %v1322_v14  ;;  %v1331_v54 = vld [vmem:[#allocation2 + $0x2d0] ss:$8 sps:$4 sm:$0xff]  }
  0x50   :  { %734 = vmatpush1.bf16.msra.mxu0 %v1249_v55  ;;  %689 = vmatpush1.bf16.msra.mxu1 %v1324_v18  ;;  %v1336_v55 = vld [vmem:[#allocation2 + $0x2e4] ss:$8 sps:$4 sm:$0xff]  }
  0x51   :  { %746 = vmatprep.subr.bf16.mxu0 %v1255_v60  ;;  %690 = vmatprep.subr.bf16.mxu1 %v1328_v19  ;;  %v46_v60 = vld [vmem:[%s1528_s0 + $0x58] sm:$0xff]  ;;  %v154_v19 = vld [vmem:[%s1530_s2] sm:$0x3] }
  0x53   :  { %736 = vmatmul.mubr.bf16.vlgmr.msra.gmra.mrb[0].mxu0 %v51_v61  ;;  %v53_v61 = vpack.c.bf16 %v46_v60, %v39_v59 }
  0x54   :  { %747 = vmatpush1.bf16.msra.mxu0 %v1253_v0  ;;  %778 = vmatprep.mubr.bf16.mxu0 %v54_v12  ;;  %v1351_v0 = vld [vmem:[%s1531_s3 + $0x60] sm:$0xff]  }
  0x55   :  { %748 = vmatprep.subr.bf16.mxu0 %v1261_v3  ;;  %691 = vmatpush1.bf16.msra.mxu1 %v1330_v20  ;;  %v1354_v3 = vld [vmem:[%s1531_s3 + $0x28] sm:$0xff]  }
  0x56   :  { %789 = vmatprep.subr.bf16.mxu1 %v1339_v24 }
  0x58   :  { %749 = vmatpush1.bf16.msra.mxu0 %v1259_v6  ;;  %693 = vmatmul.mubr.bf16.vlgmr.msra.gmra.mrb[0].mxu1 %v49_v27  ;;  %v1357_v6 = vld [vmem:[%s1531_s3 + $0x78] sm:$0xff]  }
  0x59   :  { %750 = vmatprep.subr.bf16.mxu0 %v1267_v8  ;;  %790 = vmatpush1.bf16.msra.mxu1 %v1337_v26 }
  0x5a   :  { %821 = vmatprep.mubr.bf16.mxu1 %v1386_v31  ;;  %1154 = vmatprep.subr.bf16.mxu1 %v1343_v29 }
  0x5c   :  { %751 = vmatpush1.bf16.msra.mxu0 %v1265_v11 }
  0x5d   :  { %752 = vmatprep.subr.bf16.mxu0 %v1273_v15 }
  0x60   :  { %753 = vmatpush1.bf16.msra.mxu0 %v1271_v16  ;;  %1127 = vmatmul.mubr.msk.bf16.vlgmr.msra.gmra.mrb[4].mxu1 %vm656_vm0, %v55_v36  ;;  %v156_v16 = vlaneseq }
  0x61   :  { %754 = vmatprep.subr.bf16.mxu0 %v1279_v17  ;;  %1155 = vmatpush3.bf16.msra.mxu1 %v1344_v37 }
  0x62   :  { %1156 = vmatprep.subr.bf16.mxu1 %v1345_v39  ;;  %v157_v17 = vshrl.u32 %v156_v16, 7 }
  0x64   :  { %755 = vmatpush1.bf16.msra.mxu0 %v1277_v23  ;;  %v158_v18 = vsub.s32 0, %v157_v17  ;;  %v162_v20 = vsub.s32 1, %v157_v17 }
  0x65   :  { %756 = vmatprep.subr.bf16.mxu0 %v1285_v25  ;;  %1157 = vmatpush3.bf16.msra.mxu1 %v1346_v41 }
  0x66   :  { %1158 = vmatprep.subr.bf16.mxu1 %v1347_v43  ;;  %v159_v21 = vrot.slane %v154_v19, %v158_v18  ;;  %v163_v22 = vrot.slane %v154_v19, %v162_v20 }
  0x68   :  { %757 = vmatpush1.bf16.msra.mxu0 %v1283_v28 }
  0x69   :  { %758 = vmatprep.subr.bf16.mxu0 %v1291_v30  ;;  %1159 = vmatpush3.bf16.msra.mxu1 %v1348_v45 }
  0x6a   :  { %1160 = vmatprep.subr.bf16.mxu1 %v1349_v62 }
  0x6c   :  { %759 = vmatpush1.bf16.msra.mxu0 %v1289_v34 }
  0x6d   :  { %760 = vmatprep.subr.bf16.mxu0 %v1297_v35  ;;  %1161 = vmatpush3.bf16.msra.mxu1 %v1350_v63 }
  0x6e   :  { %1162 = vmatprep.subr.bf16.mxu1 %v1351_v0 }
  0x70   :  { %761 = vmatpush1.bf16.msra.mxu0 %v1295_v38 }
  0x71   :  { %762 = vmatprep.subr.bf16.mxu0 %v1303_v40  ;;  %1163 = vmatpush3.bf16.msra.mxu1 %v1352_v1 }
  0x72   :  { %1164 = vmatprep.subr.bf16.mxu1 %v1353_v2 }
  0x74   :  { %763 = vmatpush1.bf16.msra.mxu0 %v1301_v42 }
  0x75   :  { %764 = vmatprep.subr.bf16.mxu0 %v1309_v44  ;;  %1165 = vmatpush3.bf16.msra.mxu1 %v1354_v3 }
  0x76   :  { %1166 = vmatprep.subr.bf16.mxu1 %v1355_v4 }
  0x78   :  { %765 = vmatpush1.bf16.msra.mxu0 %v1307_v46 }
  0x79   :  { %766 = vmatprep.subr.bf16.mxu0 %v1315_v47  ;;  %1167 = vmatpush3.bf16.msra.mxu1 %v1356_v5 }
  0x7a   :  { %1168 = vmatprep.subr.bf16.mxu1 %v1357_v6 }
  0x7c   :  { %767 = vmatpush1.bf16.msra.mxu0 %v1313_v48 }
  0x7d   :  { %768 = vmatprep.subr.bf16.mxu0 %v1321_v49  ;;  %1169 = vmatpush3.bf16.msra.mxu1 %v1358_v7  ;;  %v1128_v49 = vld [vmem:[%s1532_s4] ss:$0 sm:$0xff] }
  0x80   :  { %769 = vmatpush1.bf16.msra.mxu0 %v1319_v50 }
  0x81   :  { %770 = vmatprep.subr.bf16.mxu0 %v1327_v51 }
  0x84   :  { %771 = vmatpush1.bf16.msra.mxu0 %v1325_v52 }
  0x85   :  { %772 = vmatprep.subr.bf16.mxu0 %v1333_v53 }
  0x88   :  { %773 = vmatpush1.bf16.msra.mxu0 %v1331_v54 }
  0x89   :  { %774 = vmatprep.subr.bf16.mxu0 %v1336_v55 }
  0x8c   :  { %775 = vmatpush1.bf16.msra.mxu0 %v1334_v56 }
  0x8d   :  { %776 = vmatprep.subr.bf16.mxu0 %v1342_v57 }
  0x90   :  { %777 = vmatpush1.bf16.msra.mxu0 %v1340_v58 }
  0x93   :  { %779 = vmatmul.mubr.bf16.vlgmr.msra.gmra.mrb[0].mxu0 %v53_v61 }
 0x12b   :  { %v694_v8 = vpop.f32.mrb[0].mxu1 }
 0x12c   :  { %v696_v9 = vpop.f32.mrb[1].mxu1  ;;  %v695_v23 = vadd.f32 %v694_v8, %v159_v21 }
 0x12d   :  { %v698_v10 = vpop.f32.mrb[2].mxu1  ;;  %v697_v24 = vadd.f32 %v696_v9, %v163_v22 }
 0x12e   :  { %v700_v11 = vpop.f32.mrb[3].mxu1  ;;  %v699_v26 = vadd.f32 %v698_v10, %v159_v21 }
 0x12f   :  { %v701_v29 = vadd.f32 %v700_v11, %v163_v22 }
 0x133   :  { %v823_v12 = vpop.f32.mrb[4].mxu1 }
 0x134   :  { %v825_v13 = vpop.f32.mrb[5].mxu1 }
 0x135   :  { %v827_v14 = vpop.f32.mrb[6].mxu1 }
 0x136   :  { %v829_v15 = vpop.f32.mrb[7].mxu1 }
 0x166   :  { %v780_v25 = vpop.f32.mrb[0].mxu0 }
 0x167   :  { %v1177_v27 = vadd.f32 %v780_v25, %v695_v23  ;;  %v782_v28 = vpop.f32.mrb[1].mxu0 }
 0x168   :  { %v1180_v30 = vadd.f32 %v782_v28, %v697_v24  ;;  %v784_v31 = vpop.f32.mrb[2].mxu0 }
 0x169   :  { %v1178_v32 = vadd.f32 %v1177_v27, %v823_v12  ;;  %v1183_v33 = vadd.f32 %v784_v31, %v699_v26  ;;  %v786_v34 = vpop.f32.mrb[3].mxu0 }
 0x16a   :  { %v1181_v35 = vadd.f32 %v1180_v30, %v825_v13  ;;  %v1186_v36 = vadd.f32 %v786_v34, %v701_v29 }
 0x16b   :  { %v1184_v37 = vadd.f32 %v1183_v33, %v827_v14  ;;  %v832_v39 = vmax.f32 %v1178_v32, 0.0 }
 0x16c   :  { %v1187_v38 = vadd.f32 %v1186_v36, %v829_v15  ;;  %v833_v41 = vmax.f32 %v1181_v35, 0.0 }
 0x16d   :  { %v834_v40 = vmax.f32 %v1184_v37, 0.0 }
 0x16e   :  { %v835_v42 = vmax.f32 %v1187_v38, 0.0 }
 0x16f   :  { %v836_v43 = vpack.c.bf16 %v834_v40, %v832_v39 }
 0x170   :  { %v837_v44 = vpack.c.bf16 %v835_v42, %v833_v41 }
 0x172   :  { %1005 = vmatprep.mubr.bf16.mxu1 %v837_v44 }
 0x173   :  { %1006 = vmatmul.mubr.bf16.vlgmr.msra.gmra.mrb[8].mxu1 %v836_v43 }
 0x246   :  { %v1170_v45 = vpop.f32.mrb[8].mxu1 }
 0x247   :  { %v1171_v46 = vpop.f32.mrb[9].mxu1 }
 0x248   :  { %v1172_v47 = vadd.f32 %v1171_v46, %v1170_v45  ;;  %v1173_v48 = vpop.f32.mrb[10].mxu1 }
 0x249   :  { %v1174_v50 = vpop.f32.mrb[11].mxu1 }
 0x24a   :  { %v1175_v51 = vadd.f32 %v1174_v50, %v1173_v48  ;;  %v1008_v52 = vadd.f32 %v1172_v47, %v1128_v49 }
 0x24c   :  { %v1011_v53 = vadd.f32 %v1175_v51, %v1128_v49 }
 0x24e   :  { %v1152_v54 = vpack.c.bf16 %v1011_v53, %v1008_v52 }
 0x250   :  { %1153 = vst [vmem:[%s1533_s5] sm:$0xff] %v1152_v54  }
 0x251   :  { %1028 = vsyncpa [#allocation3], 1 }

</bundles_post_ra>
